<compile_context>
chip_gen: v5e
topology: v5e:2x2
jax: 0.10.0
libtpu: 0.0.40
codegen_flags: <defaults>
</compile_context>

<pallas_src>
import functools

import jax
import jax.numpy as jnp
from jax import lax
from jax.experimental import pallas as pl
from jax.experimental.pallas import tpu as pltpu

_LANES = 128
_SUBLANES = 8


def _iou_sums_kernel(x_ref, t_ref, inter_ref, total_ref, *,
                     block_rows, tiles_per_part, valid_rows):
    """Accumulate (8, 128) partial sums of intersection and total per partition."""
    p = pl.program_id(0)   # core-split partition ("parallel")
    k = pl.program_id(1)   # reduction step within the partition ("arbitrary")

    @pl.when(k == 0)
    def _init():
        inter_ref[...] = jnp.zeros_like(inter_ref)
        total_ref[...] = jnp.zeros_like(total_ref)

    logical_tile = p * tiles_per_part + k
    row0 = logical_tile * block_rows

    @pl.when(row0 < valid_rows)          # skip fully out-of-range (clamped) tiles
    def _compute():
        x = x_ref[...]                                   # native dtype (f32/bf16/...)
        t = t_ref[...].astype(jnp.float32)

        def _accumulate(inter_part, total_part):
            # Reduce each tile only down to (8, 128): pure vreg adds, no
            # per-step cross-sublane XLU op, no accumulator reshape.
            inter_ref[...] += inter_part.reshape(-1, _SUBLANES, _LANES).sum(axis=0)
            total_ref[...] += total_part.reshape(-1, _SUBLANES, _LANES).sum(axis=0)

        @pl.when(row0 + block_rows <= valid_rows)        # fast path: full tile
        def _full_tile():
            pred = x >= 0.5
            x_bin = pred.astype(jnp.float32)
            _accumulate(jnp.where(pred, t, 0.0), x_bin + t)

        @pl.when(row0 + block_rows > valid_rows)         # ragged last tile only
        def _masked_tile():
            row_idx = row0 + lax.broadcasted_iota(jnp.int32, x.shape, 0)
            valid = row_idx < valid_rows
            pred = jnp.logical_and(x >= 0.5, valid)
            x_bin = pred.astype(jnp.float32)
            t_val = jnp.where(valid, t, 0.0)
            _accumulate(jnp.where(pred, t_val, 0.0), x_bin + t_val)


def _num_tensorcores():
    """Best-effort TensorCore count.  Falls back to 2: on 1-TC chips a size-2
    'parallel' axis costs ~nothing, while defaulting to 1 would idle a v7x core."""
    try:
        info = pltpu.get_tpu_info()
    except Exception:
        return 2
    for name in ("num_cores", "core_count", "num_tensorcores",
                 "tensorcores_per_chip", "num_cores_per_chip"):
        val = getattr(info, name, None)
        if isinstance(val, int) and 1 <= val <= 16:
            return val
    return 2


def iou_loss_integer(inputs, targets, smooth=1.0, *, block_rows=None):
    """JAX/Pallas equivalent of IoULoss_integer.forward. Returns a scalar f32."""
    lanes = _LANES
    x = jnp.ravel(inputs)
    t = jnp.ravel(targets)
    n = x.shape[0]

    rows = n // lanes
    rem = n - rows * lanes

    # Tiny problems: pure-jnp fallback (not worth a kernel, keeps the kernel
    # free of sub-(8,128) block shapes).
    if rows < _SUBLANES:
        xb = (x >= 0.5).astype(jnp.float32)
        tb = t.astype(jnp.float32)
        inter = jnp.sum(xb * tb)
        total = jnp.sum(xb + tb)
        return (inter + smooth) / ((total - inter) + smooth)

    # Main body: the largest 128-multiple prefix viewed as (rows, 128).
    # When n % 128 == 0 (the common case) this is a pure bitcast reshape — no copy.
    n_main = rows * lanes
    if rem == 0:
        x2 = x.reshape(rows, lanes)
        t2 = t.reshape(rows, lanes)
    else:
        # TODO(synk): the ragged-n prefix slice still costs one HBM copy per input;
        # a manual-DMA 1-D path (memory_space=pl.ANY) would remove it entirely.
        x2 = lax.slice(x, (0,), (n_main,)).reshape(rows, lanes)
        t2 = lax.slice(t, (0,), (n_main,)).reshape(rows, lanes)

    x_isz = jnp.dtype(x2.dtype).itemsize
    t_isz = jnp.dtype(t2.dtype).itemsize

    if block_rows is None:
        # ~4 MiB per input per pipeline buffer; scales up for narrower dtypes
        # (8192 rows for f32, 16384 for bf16, 32768 for int8 — all 32-aligned).
        block_rows = (4 * 1024 * 1024) // (lanes * max(x_isz, t_isz))
    block_rows = max(_SUBLANES, min(int(block_rows), (rows // _SUBLANES) * _SUBLANES))
    block_rows = (block_rows // _SUBLANES) * _SUBLANES   # keep sublane-aligned

    tiles_total = -(-rows // block_rows)
    num_parallel = max(1, min(_num_tensorcores(), tiles_total))
    tiles_per_part = -(-tiles_total // num_parallel)

    kernel = functools.partial(
        _iou_sums_kernel,
        block_rows=block_rows,
        tiles_per_part=tiles_per_part,
        valid_rows=rows,
    )

    def in_map(p, k):
        b = p * tiles_per_part + k
        # Clamp so padded logical tiles of the last partition never DMA past the
        # array; their compute is skipped in-kernel.
        return (jnp.minimum(b, tiles_total - 1), 0)

    out_spec = pl.BlockSpec((_SUBLANES, lanes), lambda p, k: (p, 0))

    per_step_in_bytes = block_rows * lanes * (x_isz + t_isz)
    vmem_limit = int(min(64 * 1024 * 1024, 2 * per_step_in_bytes + 4 * 1024 * 1024))

    cost = pl.CostEstimate(
        flops=int(6 * n_main),
        transcendentals=0,
        bytes_accessed=int(n_main * (x_isz + t_isz)),
    )

    inter_parts, total_parts = pl.pallas_call(
        kernel,
        out_shape=(
            jax.ShapeDtypeStruct((num_parallel * _SUBLANES, lanes), jnp.float32),
            jax.ShapeDtypeStruct((num_parallel * _SUBLANES, lanes), jnp.float32),
        ),
        grid_spec=pltpu.PrefetchScalarGridSpec(
            num_scalar_prefetch=0,
            grid=(num_parallel, tiles_per_part),
            in_specs=[
                pl.BlockSpec((block_rows, lanes), in_map),
                pl.BlockSpec((block_rows, lanes), in_map),
            ],
            out_specs=[out_spec, out_spec],
        ),
        compiler_params=pltpu.CompilerParams(
            dimension_semantics=("parallel", "arbitrary"),
            vmem_limit_bytes=vmem_limit,
        ),
        cost_estimate=cost,
    )(x2, t2)

    intersection = jnp.sum(inter_parts)
    total = jnp.sum(total_parts)

    if rem:
        # Fold the <=127-element tail into the scalars (tiny jnp fusion).
        x_tail = x[n_main:]
        t_tail = t[n_main:].astype(jnp.float32)
        xb_tail = (x_tail >= 0.5).astype(jnp.float32)
        intersection = intersection + jnp.sum(xb_tail * t_tail)
        total = total + jnp.sum(xb_tail + t_tail)

    union = total - intersection
    return (intersection + smooth) / (union + smooth)


def _reference(inputs, targets, smooth=1.0):
    x = jnp.ravel(inputs)
    xb = jnp.where(x >= 0.5, 1.0, 0.0).astype(jnp.float32)
    t = jnp.ravel(targets).astype(jnp.float32)
    inter = jnp.sum(xb * t)
    total = jnp.sum(xb + t)
    return (inter + smooth) / ((total - inter) + smooth)


if __name__ == "__main__":
    key = jax.random.PRNGKey(0)
    k1, k2 = jax.random.split(key)

    iou_fn = jax.jit(iou_loss_integer, static_argnames=("block_rows",))

    # Small (B, C, H, W) shape consistent with a segmentation forward.
    shape = (2, 4, 16, 16)
    inputs = jax.random.uniform(k1, shape, dtype=jnp.float32)            # prob-like
    targets = (jax.random.uniform(k2, shape) > 0.5).astype(jnp.float32)  # binary masks

    iou = jax.block_until_ready(iou_fn(inputs, targets))
    ref = _reference(inputs, targets)
    assert jnp.allclose(iou, ref, rtol=1e-6, atol=1e-6), (iou, ref)

    # Extra configs exercising: the ragged (non-128-multiple) tail fold, the
    # multi-tile reduction with an odd tile count (clamped + skipped trailing
    # tile on the 2-way split), narrow dtypes (bf16 inputs / int8 targets), and
    # the tiny-input pure-jnp fallback.
    extra = [
        ((3, 5, 9, 11), None, jnp.float32, jnp.float32),   # ragged tail (n=1485)
        ((2, 4, 64, 128), 48, jnp.float32, jnp.float32),   # 11 tiles -> clamp + skip
        ((2, 4, 32, 128), None, jnp.bfloat16, jnp.int8),   # narrow-dtype streaming
        ((2, 3, 10, 10), None, jnp.float32, jnp.float32),  # tiny: jnp fallback
    ]
    for extra_shape, br, in_dt, tgt_dt in extra:
        a = jax.random.uniform(k1, extra_shape, dtype=in_dt)
        b = (jax.random.uniform(k2, extra_shape) > 0.5).astype(tgt_dt)
        got = jax.block_until_ready(iou_fn(a, b, block_rows=br))
        want = _reference(a, b)
        assert jnp.allclose(got, want, rtol=1e-6, atol=1e-6), (extra_shape, got, want)

    print("KERNEL_OK")
</pallas_src>

<mosaic_0001>
module attributes {stable_mosaic.version = 11 : i64} {
  func.func @_iou_sums_kernel(%arg0: i32, %arg1: i32, %arg2: memref<16x128xf32, #tpu.memory_space<vmem>>, %arg3: memref<16x128xf32, #tpu.memory_space<vmem>>, %arg4: memref<8x128xf32, #tpu.memory_space<vmem>>, %arg5: memref<8x128xf32, #tpu.memory_space<vmem>>) attributes {dimension_semantics = [#tpu.dimension_semantics<parallel>, #tpu.dimension_semantics<arbitrary>], iteration_bounds = array<i64: 1, 1>, scalar_prefetch = 0 : i64, scratch_operands = 0 : i64, tpu.core_type = #tpu.core_type<tc>, window_params = [{transform_indices = @transform_0, window_bounds = array<i64: 16, 128>}, {transform_indices = @transform_1, window_bounds = array<i64: 16, 128>}, {transform_indices = @transform_2, window_bounds = array<i64: 8, 128>}, {transform_indices = @transform_3, window_bounds = array<i64: 8, 128>}]} {
    %c0_i32 = arith.constant 0 : i32
    %0 = arith.cmpi eq, %arg1, %c0_i32 : i32
    %1 = arith.extui %0 : i1 to i32
    %c0_i32_0 = arith.constant 0 : i32
    %2 = arith.cmpi ne, %1, %c0_i32_0 : i32
    scf.if %2 {
      %cst = arith.constant 0.000000e+00 : f32
      %9 = vector.broadcast %cst : f32 to vector<8x128xf32>
      %c0 = arith.constant 0 : index
      %c0_3 = arith.constant 0 : index
      %10 = vector.load %arg4[%c0, %c0_3] : memref<8x128xf32, #tpu.memory_space<vmem>>, vector<8x128xf32>
      tpu.vector_store %arg4[%c0, %c0_3], %9 {strides = array<i32>} : memref<8x128xf32, #tpu.memory_space<vmem>>, vector<8x128xf32>,
      %cst_4 = arith.constant 0.000000e+00 : f32
      %11 = vector.broadcast %cst_4 : f32 to vector<8x128xf32>
      %c0_5 = arith.constant 0 : index
      %c0_6 = arith.constant 0 : index
      %12 = vector.load %arg5[%c0_5, %c0_6] : memref<8x128xf32, #tpu.memory_space<vmem>>, vector<8x128xf32>
      tpu.vector_store %arg5[%c0_5, %c0_6], %11 {strides = array<i32>} : memref<8x128xf32, #tpu.memory_space<vmem>>, vector<8x128xf32>,
    } else {
    }
    %c1_i32 = arith.constant 1 : i32
    %3 = arith.muli %arg0, %c1_i32 : i32
    %4 = arith.addi %3, %arg1 : i32
    %c16_i32 = arith.constant 16 : i32
    %5 = arith.muli %4, %c16_i32 : i32
    %c16_i32_1 = arith.constant 16 : i32
    %6 = arith.cmpi slt, %5, %c16_i32_1 : i32
    %7 = arith.extui %6 : i1 to i32
    %c0_i32_2 = arith.constant 0 : i32
    %8 = arith.cmpi ne, %7, %c0_i32_2 : i32
    scf.if %8 {
      %c0 = arith.constant 0 : index
      %c0_3 = arith.constant 0 : index
      %9 = vector.load %arg2[%c0, %c0_3] : memref<16x128xf32, #tpu.memory_space<vmem>>, vector<16x128xf32>
      %c0_4 = arith.constant 0 : index
      %c0_5 = arith.constant 0 : index
      %10 = vector.load %arg3[%c0_4, %c0_5] : memref<16x128xf32, #tpu.memory_space<vmem>>, vector<16x128xf32>
      %c16_i32_6 = arith.constant 16 : i32
      %11 = arith.addi %5, %c16_i32_6 : i32
      %c16_i32_7 = arith.constant 16 : i32
      %12 = arith.cmpi sle, %11, %c16_i32_7 : i32
      %13 = arith.extui %12 : i1 to i32
      %c0_i32_8 = arith.constant 0 : i32
      %14 = arith.cmpi ne, %13, %c0_i32_8 : i32
      scf.if %14 {
        %cst = arith.constant 5.000000e-01 : f32
        %19 = vector.broadcast %cst : f32 to vector<16x128xf32>
        %20 = arith.cmpf oge, %9, %19 : vector<16x128xf32>
        %21 = arith.extui %20 : vector<16x128xi1> to vector<16x128xi32>
        %22 = arith.sitofp %21 : vector<16x128xi32> to vector<16x128xf32>
        %cst_12 = arith.constant 0.000000e+00 : f32
        %23 = vector.broadcast %cst_12 : f32 to vector<16x128xf32>
        %24 = arith.select %20, %10, %23 : vector<16x128xi1>, vector<16x128xf32>
        %25 = arith.addf %22, %10 : vector<16x128xf32>
        %c0_13 = arith.constant 0 : index
        %c0_14 = arith.constant 0 : index
        %26 = vector.load %arg4[%c0_13, %c0_14] : memref<8x128xf32, #tpu.memory_space<vmem>>, vector<8x128xf32>
        %27 = vector.shape_cast %24 : vector<16x128xf32> to vector<2x8x128xf32>
        %cst_15 = arith.constant dense<0.000000e+00> : vector<8x128xf32>
        %28 = vector.multi_reduction <add>, %27, %cst_15 [0] : vector<2x8x128xf32> to vector<8x128xf32>
        %29 = arith.addf %26, %28 : vector<8x128xf32>
        %c0_16 = arith.constant 0 : index
        %c0_17 = arith.constant 0 : index
        %30 = vector.load %arg4[%c0_16, %c0_17] : memref<8x128xf32, #tpu.memory_space<vmem>>, vector<8x128xf32>
        tpu.vector_store %arg4[%c0_16, %c0_17], %29 {strides = array<i32>} : memref<8x128xf32, #tpu.memory_space<vmem>>, vector<8x128xf32>,
        %c0_18 = arith.constant 0 : index
        %c0_19 = arith.constant 0 : index
        %31 = vector.load %arg5[%c0_18, %c0_19] : memref<8x128xf32, #tpu.memory_space<vmem>>, vector<8x128xf32>
        %32 = vector.shape_cast %25 : vector<16x128xf32> to vector<2x8x128xf32>
        %cst_20 = arith.constant dense<0.000000e+00> : vector<8x128xf32>
        %33 = vector.multi_reduction <add>, %32, %cst_20 [0] : vector<2x8x128xf32> to vector<8x128xf32>
        %34 = arith.addf %31, %33 : vector<8x128xf32>
        %c0_21 = arith.constant 0 : index
        %c0_22 = arith.constant 0 : index
        %35 = vector.load %arg5[%c0_21, %c0_22] : memref<8x128xf32, #tpu.memory_space<vmem>>, vector<8x128xf32>
        tpu.vector_store %arg5[%c0_21, %c0_22], %34 {strides = array<i32>} : memref<8x128xf32, #tpu.memory_space<vmem>>, vector<8x128xf32>,
      } else {
      }
      %c16_i32_9 = arith.constant 16 : i32
      %15 = arith.addi %5, %c16_i32_9 : i32
      %c16_i32_10 = arith.constant 16 : i32
      %16 = arith.cmpi sgt, %15, %c16_i32_10 : i32
      %17 = arith.extui %16 : i1 to i32
      %c0_i32_11 = arith.constant 0 : i32
      %18 = arith.cmpi ne, %17, %c0_i32_11 : i32
      scf.if %18 {
        %19 = tpu.iota {dimensions = array<i32: 0>} : vector<16x128xi32>
        %20 = vector.broadcast %5 : i32 to vector<16x128xi32>
        %21 = arith.addi %20, %19 : vector<16x128xi32>
        %c16_i32_12 = arith.constant 16 : i32
        %22 = vector.broadcast %c16_i32_12 : i32 to vector<16x128xi32>
        %23 = arith.cmpi slt, %21, %22 : vector<16x128xi32>
        %cst = arith.constant 5.000000e-01 : f32
        %24 = vector.broadcast %cst : f32 to vector<16x128xf32>
        %25 = arith.cmpf oge, %9, %24 : vector<16x128xf32>
        %26 = arith.andi %25, %23 : vector<16x128xi1>
        %27 = arith.extui %26 : vector<16x128xi1> to vector<16x128xi32>
        %28 = arith.sitofp %27 : vector<16x128xi32> to vector<16x128xf32>
        %cst_13 = arith.constant 0.000000e+00 : f32
        %29 = vector.broadcast %cst_13 : f32 to vector<16x128xf32>
        %30 = arith.select %23, %10, %29 : vector<16x128xi1>, vector<16x128xf32>
        %cst_14 = arith.constant 0.000000e+00 : f32
        %31 = vector.broadcast %cst_14 : f32 to vector<16x128xf32>
        %32 = arith.select %26, %30, %31 : vector<16x128xi1>, vector<16x128xf32>
        %33 = arith.addf %28, %30 : vector<16x128xf32>
        %c0_15 = arith.constant 0 : index
        %c0_16 = arith.constant 0 : index
        %34 = vector.load %arg4[%c0_15, %c0_16] : memref<8x128xf32, #tpu.memory_space<vmem>>, vector<8x128xf32>
        %35 = vector.shape_cast %32 : vector<16x128xf32> to vector<2x8x128xf32>
        %cst_17 = arith.constant dense<0.000000e+00> : vector<8x128xf32>
        %36 = vector.multi_reduction <add>, %35, %cst_17 [0] : vector<2x8x128xf32> to vector<8x128xf32>
        %37 = arith.addf %34, %36 : vector<8x128xf32>
        %c0_18 = arith.constant 0 : index
        %c0_19 = arith.constant 0 : index
        %38 = vector.load %arg4[%c0_18, %c0_19] : memref<8x128xf32, #tpu.memory_space<vmem>>, vector<8x128xf32>
        tpu.vector_store %arg4[%c0_18, %c0_19], %37 {strides = array<i32>} : memref<8x128xf32, #tpu.memory_space<vmem>>, vector<8x128xf32>,
        %c0_20 = arith.constant 0 : index
        %c0_21 = arith.constant 0 : index
        %39 = vector.load %arg5[%c0_20, %c0_21] : memref<8x128xf32, #tpu.memory_space<vmem>>, vector<8x128xf32>
        %40 = vector.shape_cast %33 : vector<16x128xf32> to vector<2x8x128xf32>
        %cst_22 = arith.constant dense<0.000000e+00> : vector<8x128xf32>
        %41 = vector.multi_reduction <add>, %40, %cst_22 [0] : vector<2x8x128xf32> to vector<8x128xf32>
        %42 = arith.addf %39, %41 : vector<8x128xf32>
        %c0_23 = arith.constant 0 : index
        %c0_24 = arith.constant 0 : index
        %43 = vector.load %arg5[%c0_23, %c0_24] : memref<8x128xf32, #tpu.memory_space<vmem>>, vector<8x128xf32>
        tpu.vector_store %arg5[%c0_23, %c0_24], %42 {strides = array<i32>} : memref<8x128xf32, #tpu.memory_space<vmem>>, vector<8x128xf32>,
      } else {
      }
    } else {
    }
    return
  }
  func.func @transform_0(%arg0: i32, %arg1: i32) -> (i32, i32) {
    %c1_i32 = arith.constant 1 : i32
    %0 = arith.muli %arg0, %c1_i32 : i32
    %1 = arith.addi %0, %arg1 : i32
    %c0_i32 = arith.constant 0 : i32
    %2 = arith.minsi %1, %c0_i32 : i32
    %c0_i32_0 = arith.constant 0 : i32
    %c0_i32_1 = arith.constant 0 : i32
    return %2, %c0_i32_0 : i32, i32
  }
  func.func @transform_1(%arg0: i32, %arg1: i32) -> (i32, i32) {
    %c1_i32 = arith.constant 1 : i32
    %0 = arith.muli %arg0, %c1_i32 : i32
    %1 = arith.addi %0, %arg1 : i32
    %c0_i32 = arith.constant 0 : i32
    %2 = arith.minsi %1, %c0_i32 : i32
    %c0_i32_0 = arith.constant 0 : i32
    %c0_i32_1 = arith.constant 0 : i32
    return %2, %c0_i32_0 : i32, i32
  }
  func.func @transform_2(%arg0: i32, %arg1: i32) -> (i32, i32) {
    %c0_i32 = arith.constant 0 : i32
    %c0_i32_0 = arith.constant 0 : i32
    return %arg0, %c0_i32 : i32, i32
  }
  func.func @transform_3(%arg0: i32, %arg1: i32) -> (i32, i32) {
    %c0_i32 = arith.constant 0 : i32
    %c0_i32_0 = arith.constant 0 : i32
    return %arg0, %c0_i32 : i32, i32
  }
}

</mosaic_0001>

<bundles_post_ra>
// kernel: iou_loss_integer.1
= control target key start
LH: loop header
LB: loop body
LE: loop exit
PB: predicated region body
PF: predicated region fallthrough
CT: control target
= control target key end

     0   :  { %v175_v4 = vmov 0.0   ;;  %s214_s0 = inlined_call_operand.vmem [shape: f32[16,128], index: 0, kind: input, shape index: {}]   ;;  %s215_s1 = inlined_call_operand.vmem [shape: f32[16,128], index: 1, kind: input, shape index: {}]   ;;  %s216_s2 = inlined_call_operand.vmem [shape: f32[8,128], index: 2, kind: output, shape index: {0}]   ;;  %s217_s3 = inlined_call_operand.vmem [shape: f32[8,128], index: 3, kind: output, shape index: {1}]  }
   0x1   :  { %v89_v0 = vld [vmem:[%s214_s0] sm:$0xff]  ;;  %v90_v1 = vld [vmem:[%s214_s0 + $0x8] sm:$0xff] }
   0x2   :  { %v91_v2 = vld [vmem:[%s215_s1] sm:$0xff]  ;;  %vm98_vm0 = vcmp.ge.f32.partialorder %v89_v0, 0.5  ;;  %vm99_vm1 = vcmp.ge.f32.partialorder %v90_v1, 0.5  ;;  %v92_v3 = vld [vmem:[%s215_s1 + $0x8] sm:$0xff] }
   0x3   :  { %v170_v5 = vsel %vm98_vm0, 1.0, %v175_v4  ;;  %v171_v6 = vsel %vm99_vm1, 1.0, %v175_v4  ;;  %v104_v7 = vsel %vm98_vm0, %v91_v2, 0.0  ;;  %v105_v8 = vsel %vm99_vm1, %v92_v3, 0.0 }
   0x4   :  { %v109_v9 = vadd.f32 %v105_v8, %v104_v7  ;;  %v106_v10 = vadd.f32 %v170_v5, %v91_v2  ;;  %v107_v11 = vadd.f32 %v171_v6, %v92_v3 }
   0x6   :  { %v113_v12 = vadd.f32 %v107_v11, %v106_v10  ;;  %111 = vst [vmem:[%s216_s2] sm:$0xff] %v109_v9 }
   0x8   :  { %115 = vst [vmem:[%s217_s3] sm:$0xff] %v113_v12 }

</bundles_post_ra>
